<compile_context>
chip_gen: v5e
topology: v5e:2x2
jax: 0.10.0
libtpu: 0.0.40
codegen_flags: <defaults>
</compile_context>

<pallas_src>
import functools

import jax
import jax.numpy as jnp
from jax.experimental import pallas as pl
from jax.experimental.pallas import tpu as pltpu


# ---------------------------------------------------------------------------
# Plain-JAX helpers mirroring the PyTorch free functions (matching / encoding)
# ---------------------------------------------------------------------------

def point_form(boxes):
    return jnp.concatenate(
        [boxes[:, :2] - boxes[:, 2:] / 2.0,
         boxes[:, :2] + boxes[:, 2:] / 2.0], axis=1)


def intersect(box_a, box_b):
    max_xy = jnp.minimum(box_a[:, None, 2:], box_b[None, :, 2:])
    min_xy = jnp.maximum(box_a[:, None, :2], box_b[None, :, :2])
    inter = jnp.clip(max_xy - min_xy, 0.0, None)
    return inter[..., 0] * inter[..., 1]


def jaccard(box_a, box_b):
    inter = intersect(box_a, box_b)
    area_a = ((box_a[:, 2] - box_a[:, 0]) * (box_a[:, 3] - box_a[:, 1]))[:, None]
    area_b = ((box_b[:, 2] - box_b[:, 0]) * (box_b[:, 3] - box_b[:, 1]))[None, :]
    return inter / (area_a + area_b - inter)


def encode(matched, priors, variances):
    g_cxcy = (matched[:, :2] + matched[:, 2:]) / 2.0 - priors[:, :2]
    g_cxcy = g_cxcy / (variances[0] * priors[:, 2:])
    g_wh = (matched[:, 2:] - matched[:, :2]) / priors[:, 2:]
    g_wh = jnp.log(g_wh) / variances[1]
    return jnp.concatenate([g_cxcy, g_wh], axis=1)


def encode_landm(matched, priors, variances):
    num_priors = priors.shape[0]
    matched = matched.reshape(num_priors, 5, 2)
    pri = jnp.broadcast_to(priors[:, None, :], (num_priors, 5, 4))
    g_cxcy = matched - pri[:, :, :2]
    g_cxcy = g_cxcy / (variances[0] * pri[:, :, 2:])
    return g_cxcy.reshape(num_priors, 10)


def match_one(threshold, truths, priors, variances, labels, landms):
    overlaps = jaccard(truths, point_form(priors))            # (A, P)
    best_prior_idx = jnp.argmax(overlaps, axis=1)             # (A,)
    best_truth_overlap = jnp.max(overlaps, axis=0)            # (P,)
    best_truth_idx = jnp.argmax(overlaps, axis=0)             # (P,)
    best_truth_overlap = best_truth_overlap.at[best_prior_idx].set(2.0)
    num_objs = truths.shape[0]
    for j in range(num_objs):                                 # matches torch loop order
        best_truth_idx = best_truth_idx.at[best_prior_idx[j]].set(j)
    matches = truths[best_truth_idx]
    conf = labels[best_truth_idx]
    matches_landm = landms[best_truth_idx]
    conf = jnp.where(best_truth_overlap < threshold, 0.0, conf)
    loc = encode(matches, priors, variances)                  # (P, 4)
    landm = encode_landm(matches_landm, priors, variances)    # (P, 10)
    # Emit lane-dense (feature rows on sublanes, priors on lanes).
    regr = jnp.concatenate([loc, landm], axis=1).T            # (14, P)
    return regr, conf


def match_targets(priors, targets, threshold, variances):
    # TODO(synk): per-image matching is data-dependent argmax + index_fill +
    # sequential overwrite; kept in plain JAX (no clean Pallas equivalent).
    regr_l, conf_l = [], []
    for idx in range(targets.shape[0]):
        truths = targets[idx][:, :4]
        labels = targets[idx][:, -1]
        landms = targets[idx][:, 4:14]
        regr, conf = match_one(threshold, truths, priors, variances, labels,
                               landms)
        regr_l.append(regr)
        conf_l.append(conf)
    regr_t = jnp.stack(regr_l, axis=1)     # (14, num, P) lane-dense targets
    conf_t = jnp.stack(conf_l, axis=0)     # (num, P)
    return regr_t, conf_t


# ---------------------------------------------------------------------------
# Fused per-prior loss kernel (lane-dense: priors on lanes, features on sublanes)
# ---------------------------------------------------------------------------

def _multibox_loss_kernel(conf_ref, pred_ref, tgt_ref, mc_ref, part_ref, *,
                          num_classes):
    blk = conf_ref[...]                                   # (C+1, T)
    conf = blk[:num_classes, :]                           # (C, T) logits (f32)
    conft = blk[num_classes:num_classes + 1, :]           # (1, T) matched label
    pos = (conft != 0.0).astype(jnp.float32)              # box/conf positives
    pos1 = (conft > 0.0).astype(jnp.float32)              # landmark positives

    # gathered = conf[:, target] with target = 1 on positives else 0
    # (conf_t[pos] = 1 in torch), via a one-hot on the tiny class (sublane) axis.
    cls = jax.lax.broadcasted_iota(jnp.int32, conf.shape, 0)
    tgt_i = (conft != 0.0).astype(jnp.int32)
    gathered = jnp.sum(conf * (cls == tgt_i).astype(conf.dtype),
                       axis=0, keepdims=True)              # (1, T)

    # One per-row-stabilized log-sum-exp feeds both the mining loss and CE.
    row_max = jnp.max(conf, axis=0, keepdims=True)
    lse = jnp.log(jnp.sum(jnp.exp(conf - row_max), axis=0, keepdims=True)) + row_max
    ce = lse - gathered                                    # per-prior cross entropy
    mine = ce * (1.0 - pos)                                # mining loss, 0 on positives
    mc_ref[...] = jnp.concatenate([mine, ce], axis=0)      # (2, T)

    # Masked smooth-L1 (beta = 1) row sums -> per-tile partial sums.
    d = pred_ref[...] - tgt_ref[...]                       # (14, T)
    ad = jnp.abs(d)
    v = jnp.where(ad < 1.0, 0.5 * d * d, ad - 0.5)
    sl1_loc = jnp.sum(v[:4, :], axis=0, keepdims=True) * pos      # (1, T)
    sl1_lm = jnp.sum(v[4:, :], axis=0, keepdims=True) * pos1      # (1, T)
    ploc = jnp.sum(sl1_loc, axis=1, keepdims=True)                # (1, 1)
    plm = jnp.sum(sl1_lm, axis=1, keepdims=True)                  # (1, 1)
    part_ref[...] = jnp.broadcast_to(
        jnp.concatenate([ploc, plm], axis=0), (2, 128))


def _cdiv(a, b):
    return (a + b - 1) // b


def _round_up(a, b):
    return _cdiv(a, b) * b


def multibox_losses_pallas(loc_data, conf_data, landm_data, regr_t, conf_t,
                           negpos_ratio, *, tile_m=16384):
    num, num_priors, num_classes = conf_data.shape
    m = num * num_priors

    # Lane-dense layout: priors on lanes (multiple of 128), features on sublanes.
    conf_pack = jnp.concatenate(
        [conf_data.reshape(m, num_classes).T.astype(jnp.float32),
         conf_t.reshape(1, m).astype(jnp.float32)], axis=0)       # (C+1, m)
    pred_pack = jnp.concatenate(
        [loc_data.reshape(m, 4).T, landm_data.reshape(m, 10).T],
        axis=0).astype(jnp.float32)                               # (14, m)
    tgt_pack = regr_t.reshape(14, m).astype(jnp.float32)          # (14, m)

    # Large lane tiles (per-step fixed cost amortised), but keep >= 2 grid
    # steps where possible so both v7x TensorCores get work.
    tile_m = max(128, (int(tile_m) // 128) * 128)
    tile = min(tile_m, _round_up(m, 128))
    if _cdiv(m, tile) < 2 and tile >= 256:
        tile = _round_up(_cdiv(m, 2), 128)
    assert tile % 128 == 0
    num_tiles = _cdiv(m, tile)
    m_pad = num_tiles * tile

    def pad(a):
        return a if m_pad == m else jnp.pad(a, ((0, 0), (0, m_pad - m)))

    def in_spec(rows):
        return pl.BlockSpec((rows, tile), lambda i: (0, i))

    mine_ce, partials = pl.pallas_call(
        functools.partial(_multibox_loss_kernel, num_classes=num_classes),
        out_shape=[jax.ShapeDtypeStruct((2, m_pad), jnp.float32),
                   jax.ShapeDtypeStruct((2, num_tiles * 128), jnp.float32)],
        grid_spec=pltpu.PrefetchScalarGridSpec(
            num_scalar_prefetch=0,
            grid=(num_tiles,),
            in_specs=[in_spec(num_classes + 1), in_spec(14), in_spec(14)],
            out_specs=[pl.BlockSpec((2, tile), lambda i: (0, i)),
                       pl.BlockSpec((2, 128), lambda i: (0, i))],
        ),
        compiler_params=pltpu.CompilerParams(
            dimension_semantics=("parallel",),
            vmem_limit_bytes=32 * 1024 * 1024,
        ),
    )(pad(conf_pack), pad(pred_pack), pad(tgt_pack))

    # Padded lanes carry nonzero mining loss (~log C): keep the [:m] slice.
    mine = mine_ce[0, :m].reshape(num, num_priors)
    ce = mine_ce[1, :m].reshape(num, num_priors)
    psums = partials.reshape(2, num_tiles, 128)[:, :, 0].sum(axis=1)
    loss_l_sum, loss_landm_sum = psums[0], psums[1]

    pos = conf_t != 0
    pos1 = conf_t > 0
    num_pos = jnp.sum(pos.astype(jnp.int32), axis=1, keepdims=True)
    num_neg = jnp.minimum(negpos_ratio * num_pos, num_priors - 1)

    # Hard negative mining: one descending sort + per-image k-th-value
    # threshold (same selection as the rank-based argsort(argsort) modulo
    # exact ties).
    # TODO(synk): the per-image sort has no clean Pallas equivalent on TPU.
    sorted_desc = -jnp.sort(-mine, axis=1)
    kth = jnp.take_along_axis(sorted_desc, num_neg, axis=1)       # (num, 1)
    neg = mine > kth
    sel = jnp.logical_or(pos, neg)
    loss_c_sum = jnp.sum(jnp.where(sel, ce, 0.0))

    n = jnp.maximum(jnp.sum(num_pos).astype(jnp.float32), 1.0)
    n1 = jnp.maximum(jnp.sum(pos1.astype(jnp.float32)), 1.0)
    return loss_l_sum / n, loss_c_sum / n, loss_landm_sum / n1


def multibox_loss_forward(predictions, priors, targets, *, num_classes,
                          overlap_thresh, neg_pos, variance, tile_m=16384):
    """Equivalent of MultiBoxLoss.forward -> (loss_l, loss_c, loss_landm)."""
    loc_data, conf_data, landm_data = predictions
    assert conf_data.shape[-1] == num_classes
    regr_t, conf_t = match_targets(priors, targets, overlap_thresh, variance)
    return multibox_losses_pallas(loc_data, conf_data, landm_data,
                                  regr_t, conf_t, neg_pos, tile_m=tile_m)


# ---------------------------------------------------------------------------
# Pure-JAX reference of the same loss math (torch-faithful, for validation)
# ---------------------------------------------------------------------------

def multibox_losses_ref(loc_data, conf_data, landm_data,
                        loc_t, conf_t, landm_t, negpos_ratio):
    num, num_priors, num_classes = conf_data.shape
    pos1 = conf_t > 0
    pos = conf_t != 0

    def smooth_l1_sum(p, t, mask):
        d = p - t
        ad = jnp.abs(d)
        v = jnp.where(ad < 1.0, 0.5 * d * d, ad - 0.5)
        return jnp.sum(v * mask[..., None].astype(v.dtype))

    loss_landm = smooth_l1_sum(landm_data, landm_t, pos1)
    loss_l = smooth_l1_sum(loc_data, loc_t, pos)

    tgt = jnp.where(pos, 1, 0)
    batch_conf = conf_data.reshape(-1, num_classes)
    x_max = jnp.max(batch_conf)
    lse = jnp.log(jnp.sum(jnp.exp(batch_conf - x_max), axis=1, keepdims=True)) + x_max
    gathered = jnp.take_along_axis(batch_conf, tgt.reshape(-1, 1), axis=1)
    loss_c_all = (lse - gathered).reshape(num, num_priors)
    loss_c_all = jnp.where(pos, 0.0, loss_c_all)

    loss_idx = jnp.argsort(-loss_c_all, axis=1)
    idx_rank = jnp.argsort(loss_idx, axis=1)
    num_pos = jnp.sum(pos.astype(jnp.int32), axis=1, keepdims=True)
    num_neg = jnp.minimum(negpos_ratio * num_pos, num_priors - 1)
    neg = idx_rank < num_neg
    sel = jnp.logical_or(pos, neg)

    row_max = jnp.max(conf_data, axis=-1, keepdims=True)
    lse_r = jnp.log(jnp.sum(jnp.exp(conf_data - row_max), axis=-1,
                            keepdims=True)) + row_max
    gath = jnp.take_along_axis(conf_data, tgt[..., None], axis=-1)
    ce = (lse_r - gath)[..., 0]
    loss_c = jnp.sum(jnp.where(sel, ce, 0.0))

    n = jnp.maximum(jnp.sum(num_pos).astype(jnp.float32), 1.0)
    n1 = jnp.maximum(jnp.sum(pos1.astype(jnp.float32)), 1.0)
    return loss_l / n, loss_c / n, loss_landm / n1


if __name__ == "__main__":
    num_classes = 2
    overlap_thresh = 0.35
    neg_pos = 7
    variance = (0.1, 0.2)

    batch = 2
    grid_hw = 16
    num_priors = grid_hw * grid_hw          # 256
    num_objs = 3

    key = jax.random.PRNGKey(0)
    k_loc, k_conf, k_lm, k_ctr, k_sz, k_lmk = jax.random.split(key, 6)

    loc_data = jax.random.normal(k_loc, (batch, num_priors, 4), jnp.float32)
    conf_data = jax.random.normal(k_conf, (batch, num_priors, num_classes), jnp.float32)
    landm_data = jax.random.normal(k_lm, (batch, num_priors, 10), jnp.float32)

    # Priors: regular 16x16 grid of 0.1x0.1 anchors in (cx, cy, w, h) form.
    cs = (jnp.arange(grid_hw, dtype=jnp.float32) + 0.5) / grid_hw
    cy, cx = jnp.meshgrid(cs, cs, indexing="ij")
    priors = jnp.stack([cx.ravel(), cy.ravel(),
                        jnp.full((num_priors,), 0.1, jnp.float32),
                        jnp.full((num_priors,), 0.1, jnp.float32)], axis=1)

    # Targets: (batch, num_objs, 15) = 4 box (x1,y1,x2,y2) + 10 landmarks + label.
    centers = jax.random.uniform(k_ctr, (batch, num_objs, 2), minval=0.25, maxval=0.75)
    sizes = jax.random.uniform(k_sz, (batch, num_objs, 2), minval=0.1, maxval=0.3)
    boxes = jnp.concatenate([centers - sizes / 2, centers + sizes / 2], axis=-1)
    landms = jax.random.uniform(k_lmk, (batch, num_objs, 10), minval=0.0, maxval=1.0)
    labels = jnp.array([[1.0, -1.0, 1.0], [1.0, 1.0, -1.0]], jnp.float32)
    targets = jnp.concatenate([boxes, landms, labels[..., None]], axis=-1)

    fwd = jax.jit(functools.partial(
        multibox_loss_forward, num_classes=num_classes,
        overlap_thresh=overlap_thresh, neg_pos=neg_pos, variance=variance))
    loss_l, loss_c, loss_landm = jax.block_until_ready(
        fwd((loc_data, conf_data, landm_data), priors, targets))

    # Validate the Pallas path against a pure-JAX (torch-faithful) reference.
    regr_t, conf_t = match_targets(priors, targets, overlap_thresh, variance)
    loc_t = jnp.transpose(regr_t[:4], (1, 2, 0))      # (num, P, 4)
    landm_t = jnp.transpose(regr_t[4:], (1, 2, 0))    # (num, P, 10)
    ref_l, ref_c, ref_landm = multibox_losses_ref(
        loc_data, conf_data, landm_data, loc_t, conf_t, landm_t, neg_pos)

    assert bool(jnp.isfinite(loss_l)) and bool(jnp.isfinite(loss_c)) and bool(jnp.isfinite(loss_landm))
    assert jnp.allclose(loss_l, ref_l, atol=1e-4, rtol=1e-4)
    assert jnp.allclose(loss_c, ref_c, atol=1e-4, rtol=1e-4)
    assert jnp.allclose(loss_landm, ref_landm, atol=1e-4, rtol=1e-4)

    print("KERNEL_OK")
</pallas_src>

<mosaic_0001>
module attributes {stable_mosaic.version = 11 : i64} {
  func.func @_multibox_loss_kernel(%arg0: i32, %arg1: memref<3x256xf32, #tpu.memory_space<vmem>>, %arg2: memref<14x256xf32, #tpu.memory_space<vmem>>, %arg3: memref<14x256xf32, #tpu.memory_space<vmem>>, %arg4: memref<2x256xf32, #tpu.memory_space<vmem>>, %arg5: memref<2x128xf32, #tpu.memory_space<vmem>>) attributes {dimension_semantics = [#tpu.dimension_semantics<parallel>], iteration_bounds = array<i64: 2>, scalar_prefetch = 0 : i64, scratch_operands = 0 : i64, tpu.core_type = #tpu.core_type<tc>, window_params = [{transform_indices = @transform_0, window_bounds = array<i64: 3, 256>}, {transform_indices = @transform_1, window_bounds = array<i64: 14, 256>}, {transform_indices = @transform_2, window_bounds = array<i64: 14, 256>}, {transform_indices = @transform_3, window_bounds = array<i64: 2, 256>}, {transform_indices = @transform_4, window_bounds = array<i64: 2, 128>}]} {
    %c0 = arith.constant 0 : index
    %c0_0 = arith.constant 0 : index
    %0 = vector.load %arg1[%c0, %c0_0] : memref<3x256xf32, #tpu.memory_space<vmem>>, vector<3x256xf32>
    %1 = vector.extract_strided_slice %0 {offsets = [0, 0], sizes = [2, 256], strides = [1, 1]} : vector<3x256xf32> to vector<2x256xf32>
    %2 = vector.extract_strided_slice %0 {offsets = [2, 0], sizes = [1, 256], strides = [1, 1]} : vector<3x256xf32> to vector<1x256xf32>
    %cst = arith.constant 0.000000e+00 : f32
    %3 = vector.broadcast %cst : f32 to vector<1x256xf32>
    %4 = arith.cmpf one, %2, %3 : vector<1x256xf32>
    %5 = arith.extui %4 : vector<1x256xi1> to vector<1x256xi32>
    %6 = arith.sitofp %5 : vector<1x256xi32> to vector<1x256xf32>
    %cst_1 = arith.constant 0.000000e+00 : f32
    %7 = vector.broadcast %cst_1 : f32 to vector<1x256xf32>
    %8 = arith.cmpf ogt, %2, %7 : vector<1x256xf32>
    %9 = arith.extui %8 : vector<1x256xi1> to vector<1x256xi32>
    %10 = arith.sitofp %9 : vector<1x256xi32> to vector<1x256xf32>
    %11 = tpu.iota {dimensions = array<i32: 0>} : vector<2x256xi32>
    %cst_2 = arith.constant 0.000000e+00 : f32
    %12 = vector.broadcast %cst_2 : f32 to vector<1x256xf32>
    %13 = arith.cmpf one, %2, %12 : vector<1x256xf32>
    %14 = arith.extui %13 : vector<1x256xi1> to vector<1x256xi32>
    %15 = vector.broadcast %14 : vector<1x256xi32> to vector<2x256xi32>
    %16 = arith.cmpi eq, %11, %15 : vector<2x256xi32>
    %17 = arith.extui %16 : vector<2x256xi1> to vector<2x256xi32>
    %18 = arith.sitofp %17 : vector<2x256xi32> to vector<2x256xf32>
    %19 = arith.mulf %1, %18 : vector<2x256xf32>
    %cst_3 = arith.constant dense<0.000000e+00> : vector<256xf32>
    %20 = vector.multi_reduction <add>, %19, %cst_3 [0] : vector<2x256xf32> to vector<256xf32>
    %21 = vector.shape_cast %20 : vector<256xf32> to vector<1x256xf32>
    %cst_4 = arith.constant dense<0xFF800000> : vector<256xf32>
    %22 = vector.multi_reduction <maximumf>, %1, %cst_4 [0] : vector<2x256xf32> to vector<256xf32>
    %23 = vector.shape_cast %22 : vector<256xf32> to vector<1x256xf32>
    %24 = vector.broadcast %23 : vector<1x256xf32> to vector<2x256xf32>
    %25 = arith.subf %1, %24 : vector<2x256xf32>
    %26 = math.exp %25 : vector<2x256xf32>
    %cst_5 = arith.constant dense<0.000000e+00> : vector<256xf32>
    %27 = vector.multi_reduction <add>, %26, %cst_5 [0] : vector<2x256xf32> to vector<256xf32>
    %28 = vector.shape_cast %27 : vector<256xf32> to vector<1x256xf32>
    %29 = math.log %28 : vector<1x256xf32>
    %30 = arith.addf %29, %23 : vector<1x256xf32>
    %31 = arith.subf %30, %21 : vector<1x256xf32>
    %cst_6 = arith.constant 1.000000e+00 : f32
    %32 = vector.broadcast %cst_6 : f32 to vector<1x256xf32>
    %33 = arith.subf %32, %6 : vector<1x256xf32>
    %34 = arith.mulf %31, %33 : vector<1x256xf32>
    %35 = tpu.concatenate %34, %31 in 0 : vector<1x256xf32>, vector<1x256xf32> -> vector<2x256xf32>
    %c0_7 = arith.constant 0 : index
    %c0_8 = arith.constant 0 : index
    %36 = vector.load %arg4[%c0_7, %c0_8] : memref<2x256xf32, #tpu.memory_space<vmem>>, vector<2x256xf32>
    tpu.vector_store %arg4[%c0_7, %c0_8], %35 {strides = array<i32>} : memref<2x256xf32, #tpu.memory_space<vmem>>, vector<2x256xf32>,
    %c0_9 = arith.constant 0 : index
    %c0_10 = arith.constant 0 : index
    %37 = vector.load %arg2[%c0_9, %c0_10] : memref<14x256xf32, #tpu.memory_space<vmem>>, vector<14x256xf32>
    %c0_11 = arith.constant 0 : index
    %c0_12 = arith.constant 0 : index
    %38 = vector.load %arg3[%c0_11, %c0_12] : memref<14x256xf32, #tpu.memory_space<vmem>>, vector<14x256xf32>
    %39 = arith.subf %37, %38 : vector<14x256xf32>
    %40 = math.absf %39 : vector<14x256xf32>
    %cst_13 = arith.constant 1.000000e+00 : f32
    %41 = vector.broadcast %cst_13 : f32 to vector<14x256xf32>
    %42 = arith.cmpf olt, %40, %41 : vector<14x256xf32>
    %cst_14 = arith.constant 5.000000e-01 : f32
    %43 = vector.broadcast %cst_14 : f32 to vector<14x256xf32>
    %44 = arith.mulf %43, %39 : vector<14x256xf32>
    %45 = arith.mulf %44, %39 : vector<14x256xf32>
    %cst_15 = arith.constant 5.000000e-01 : f32
    %46 = vector.broadcast %cst_15 : f32 to vector<14x256xf32>
    %47 = arith.subf %40, %46 : vector<14x256xf32>
    %48 = arith.select %42, %45, %47 : vector<14x256xi1>, vector<14x256xf32>
    %49 = vector.extract_strided_slice %48 {offsets = [0, 0], sizes = [4, 256], strides = [1, 1]} : vector<14x256xf32> to vector<4x256xf32>
    %cst_16 = arith.constant dense<0.000000e+00> : vector<256xf32>
    %50 = vector.multi_reduction <add>, %49, %cst_16 [0] : vector<4x256xf32> to vector<256xf32>
    %51 = vector.shape_cast %50 : vector<256xf32> to vector<1x256xf32>
    %52 = arith.mulf %51, %6 : vector<1x256xf32>
    %53 = vector.extract_strided_slice %48 {offsets = [4, 0], sizes = [10, 256], strides = [1, 1]} : vector<14x256xf32> to vector<10x256xf32>
    %cst_17 = arith.constant dense<0.000000e+00> : vector<256xf32>
    %54 = vector.multi_reduction <add>, %53, %cst_17 [0] : vector<10x256xf32> to vector<256xf32>
    %55 = vector.shape_cast %54 : vector<256xf32> to vector<1x256xf32>
    %56 = arith.mulf %55, %10 : vector<1x256xf32>
    %cst_18 = arith.constant dense<0.000000e+00> : vector<1xf32>
    %57 = vector.multi_reduction <add>, %52, %cst_18 [1] : vector<1x256xf32> to vector<1xf32>
    %58 = vector.shape_cast %57 : vector<1xf32> to vector<1x1xf32>
    %cst_19 = arith.constant dense<0.000000e+00> : vector<1xf32>
    %59 = vector.multi_reduction <add>, %56, %cst_19 [1] : vector<1x256xf32> to vector<1xf32>
    %60 = vector.shape_cast %59 : vector<1xf32> to vector<1x1xf32>
    %61 = tpu.concatenate %58, %60 in 0 : vector<1x1xf32>, vector<1x1xf32> -> vector<2x1xf32>
    %62 = vector.shape_cast %61 : vector<2x1xf32> to vector<2x1xf32>
    %63 = vector.broadcast %62 : vector<2x1xf32> to vector<2x128xf32>
    %c0_20 = arith.constant 0 : index
    %c0_21 = arith.constant 0 : index
    %64 = vector.load %arg5[%c0_20, %c0_21] : memref<2x128xf32, #tpu.memory_space<vmem>>, vector<2x128xf32>
    tpu.vector_store %arg5[%c0_20, %c0_21], %63 {strides = array<i32>} : memref<2x128xf32, #tpu.memory_space<vmem>>, vector<2x128xf32>,
    return
  }
  func.func @transform_0(%arg0: i32) -> (i32, i32) {
    %c0_i32 = arith.constant 0 : i32
    %c0_i32_0 = arith.constant 0 : i32
    return %c0_i32, %arg0 : i32, i32
  }
  func.func @transform_1(%arg0: i32) -> (i32, i32) {
    %c0_i32 = arith.constant 0 : i32
    %c0_i32_0 = arith.constant 0 : i32
    return %c0_i32, %arg0 : i32, i32
  }
  func.func @transform_2(%arg0: i32) -> (i32, i32) {
    %c0_i32 = arith.constant 0 : i32
    %c0_i32_0 = arith.constant 0 : i32
    return %c0_i32, %arg0 : i32, i32
  }
  func.func @transform_3(%arg0: i32) -> (i32, i32) {
    %c0_i32 = arith.constant 0 : i32
    %c0_i32_0 = arith.constant 0 : i32
    return %c0_i32, %arg0 : i32, i32
  }
  func.func @transform_4(%arg0: i32) -> (i32, i32) {
    %c0_i32 = arith.constant 0 : i32
    %c0_i32_0 = arith.constant 0 : i32
    return %c0_i32, %arg0 : i32, i32
  }
}

</mosaic_0001>

<bundles_post_ra>
// kernel: neg.3
= control target key start
LH: loop header
LB: loop body
LE: loop exit
PB: predicated region body
PF: predicated region fallthrough
CT: control target
= control target key end

     0   :  { %s40_s0 = inlined_call_operand.vmem [shape: f32[2,256], index: 0, kind: input, shape index: {}]   ;;  %s41_s1 = inlined_call_operand.vmem [shape: f32[2,256], index: 1, kind: output, shape index: {}]  }
   0x1   :  { %v2_v0 = vld [vmem:[%s40_s0] sm:$0x3]  ;;  %v16_v1 = vld [vmem:[%s40_s0 + $0x2] sm:$0x3] }
   0x2   :  { %v5_v2 = vxor.u32 2147483648, %v2_v0  ;;  %v12_v3 = vxor.u32 2147483648, %v16_v1 }
   0x4   :  { %7 = vst [vmem:[%s41_s1] sm:$0x3] %v5_v2 }
   0x5   :  { %17 = vst [vmem:[%s41_s1 + $0x2] sm:$0x3] %v12_v3 }

// kernel: multibox_loss_forward.1
= control target key start
LH: loop header
LB: loop body
LE: loop exit
PB: predicated region body
PF: predicated region fallthrough
CT: control target
= control target key end

     0   :  { %s778_s15 = smov 0   ;;  %s780_s16 = smov 0   ;;  %s918_s0 = inlined_call_operand.vmem [shape: f32[3,512], index: 0, kind: input, shape index: {}]   ;;  %s919_s1 = inlined_call_operand.vmem [shape: f32[14,512], index: 1, kind: input, shape index: {}]   ;;  %s920_s2 = inlined_call_operand.vmem [shape: f32[14,512], index: 2, kind: input, shape index: {}]   ;;  %s921_s3 = inlined_call_operand.vmem [shape: f32[2,512], index: 3, kind: output, shape index: {0}]   ;;  %s922_s4 = inlined_call_operand.vmem [shape: f32[2,256], index: 4, kind: output, shape index: {1}]  }
   0x1   :  { %s782_s17 = smov 0  }
   0x2 LB: > { %s794_s18 = sadd.s32 4294967295, %s749_s17   ;;  %s797_s19 = sadd.s32 1, %s749_s17   ;;  %s749_s17 = sphi %s782_s17, %s934_s17   ;;  %s745_s16 = sphi %s780_s16, %s933_s16   ;;  %s741_s15 = sphi %s778_s15, %s932_s15  }
   0x3   : > { %s45_s20 = ssub.s32 %s749_s17, %s797_s19  ;;  %s48_s21 = sadd.s32 1, %s745_s16 }
   0x4   : > { %p46_p0 = scmp.eq.s32.totalorder %s45_s20, 0  ;;  %p55_p1 = scmp.ne.s32.totalorder %s745_s16, %s741_s15 }
   0x5   : > { %p56_p2 = scmp.eq.s32.totalorder %s749_s17, 0  ;;  %p666_p4 = scmp.ge.s32.totalorder %s749_s17, 2 }
   0x6   : > { %s806_s22 = scalar_select %p46_p0, %s745_s16, %s48_s21  }
   0x7   : > { %p808_p3 = por %p56_p2, %p55_p1  ;;  %159 = sbr.rel (%p666_p4) target bundleno = 28 (0x1c), region = 16 }
   0xc   : > { %171 = sbr.rel (!%p808_p3) target bundleno = 20 (0x14), region = 24  ;;  %s173_s24 = sand.u32 (%p808_p3), 1, %s745_s16  }
   0xd   : > { %s691_s25 = sshll.u32 (%p808_p3), %s749_s17, 4  ;;  %s667_s26 = sshll.u32 (%p808_p3), %s173_s24, 5 }
   0xe   : > { %s178_s29 = scalar_lea.vmem (%p808_p3), %s919_s1, %s691_s25  ;;  %s175_s30 = scalar_lea.vmem (%p808_p3), [#allocation2], %s667_s26 }
   0xf   : > { %v191_v0 = vld [vmem:[%s178_s29] sm:$0xff] (%p808_p3)  ;;  %v193_v1 = vld [vmem:[%s178_s29 + $0x8] sm:$0xff] (%p808_p3) }
  0x10   : > { %v195_v2 = vld [vmem:[%s178_s29 + $0x20] sm:$0xff] (%p808_p3)  ;;  %192 = vst [vmem:[%s175_s30] sm:$0xff] (%p808_p3), %v191_v0  ;;  %v197_v3 = vld [vmem:[%s178_s29 + $0x28] sm:$0xff] (%p808_p3) }
  0x11   : > { %194 = vst [vmem:[%s175_s30 + $0x8] sm:$0xff] %v193_v1 }
  0x12   : > { %196 = vst [vmem:[%s175_s30 + $0x10] sm:$0xff] %v195_v2 }
  0x13   : > { %198 = vst [vmem:[%s175_s30 + $0x18] sm:$0xff] %v197_v3 }
  0x14 PF: > { %204 = sbr.rel (!%p808_p3) target bundleno = 28 (0x1c), region = 47  ;;  %s206_s5 = sand.u32 (%p808_p3), 1, %s745_s16  }
  0x15   : > { %s692_s6 = sshll.u32 (%p808_p3), %s749_s17, 4  ;;  %s670_s7 = sshll.u32 (%p808_p3), %s206_s5, 5 }
  0x16   : > { %s211_s10 = scalar_lea.vmem (%p808_p3), %s920_s2, %s692_s6  ;;  %s208_s11 = scalar_lea.vmem (%p808_p3), [#allocation3], %s670_s7 }
  0x17   : > { %v224_v4 = vld [vmem:[%s211_s10] sm:$0xff] (%p808_p3)  ;;  %v226_v5 = vld [vmem:[%s211_s10 + $0x8] sm:$0xff] (%p808_p3) }
  0x18   : > { %v228_v6 = vld [vmem:[%s211_s10 + $0x20] sm:$0xff] (%p808_p3)  ;;  %225 = vst [vmem:[%s208_s11] sm:$0xff] (%p808_p3), %v224_v4  ;;  %v230_v7 = vld [vmem:[%s211_s10 + $0x28] sm:$0xff] (%p808_p3) }
  0x19   : > { %227 = vst [vmem:[%s208_s11 + $0x8] sm:$0xff] %v226_v5 }
  0x1a   : > { %229 = vst [vmem:[%s208_s11 + $0x10] sm:$0xff] %v228_v6 }
  0x1b   : > { %231 = vst [vmem:[%s208_s11 + $0x18] sm:$0xff] %v230_v7 }
  0x1c PF: > { %p673_p5 = scmp.ge.s32.totalorder %s749_s17, 1  ;;  %p236_p6 = scmp.lt.s32.totalorder %s749_s17, 3 }
  0x1e   : > { %p237_p7 = pnand %p673_p5, %p236_p6 }
  0x1f   : > { %s243_s12 = sand.u32 (!%p237_p7), 1, %s741_s15   ;;  %s676_s14 = sshll.u32 (!%p237_p7), %s794_s18, 1 }
  0x20   : > { %240 = sbr.rel (%p237_p7) target bundleno = 311 (0x137), region = 70  ;;  %s674_s13 = sshll.u32 (!%p237_p7), %s243_s12, 5 }
  0x21   : > { %s245_s20 = scalar_lea.vmem (!%p237_p7), [#allocation2], %s674_s13  ;;  %s252_s21 = scalar_lea.vmem (!%p237_p7), [#allocation3], %s674_s13 }
  0x22   : > { %p289_p8 = scmp.lt.s32.totalorder (!%p237_p7), %s676_s14, 3  ;;  %p302_p9 = scmp.lt.s32.totalorder (!%p237_p7), %s794_s18, 1 }
  0x25   : > { %v426_v8 = vld [vmem:[%s245_s20] sm:$0xff]  ;;  %v427_v9 = vld [vmem:[%s245_s20 + $0x8] sm:$0xff]  ;;  %v428_v10 = vld [vmem:[%s245_s20 + $0x10] sm:$0x3f]  ;;  %s936_s14 = smov (!%p289_p8, %s676_s14), 3  ;;  %vm328_vm4 = vcmask 1043456  }
  0x26   : > { %v429_v11 = vld [vmem:[%s245_s20 + $0x18] sm:$0x3f]  ;;  %v430_v12 = vld [vmem:[%s252_s21] sm:$0xff]  ;;  %v431_v13 = vld [vmem:[%s252_s21 + $0x8] sm:$0xff]  ;;  %s677_s15 = sshll.u32 %s936_s14, 2  ;;  %vm338_vm5 = vcmask 1041408  }
  0x27   : > { %v432_v14 = vld [vmem:[%s252_s21 + $0x10] sm:$0x3f]  ;;  %v433_v15 = vld [vmem:[%s252_s21 + $0x18] sm:$0x3f]  ;;  %v434_v16 = vsub.f32 %v426_v8, %v430_v12  ;;  %v435_v17 = vsub.f32 %v427_v9, %v431_v13  ;;  %s292_s24 = scalar_lea.vmem %s918_s0, %s677_s15  ;;  %v751_v6 = vmov 0.0   ;;  %vm417_vm8 = vcmask 1040384  }
  0x28   : > { %v436_v18 = vsub.f32 %v428_v10, %v432_v14  ;;  %v437_v19 = vsub.f32 %v429_v11, %v433_v15  ;;  %v867_v58 = vld [vmem:[%s292_s24] sm:$0x77]  ;;  %s679_s25 = sshll.u32 %s936_s14, 1  ;;  %s938_s18 = smov (!%p302_p9, %s794_s18), 1 }
  0x29   : > { %v438_v20 = vand.u32 2147483647, %v434_v16  ;;  %v439_v21 = vand.u32 2147483647, %v435_v17  ;;  %v446_v24 = vmul.f32 0.5, %v434_v16  ;;  %v447_v27 = vmul.f32 0.5, %v435_v17  ;;  %s300_s28 = scalar_lea.vmem %s921_s3, %s679_s25 }
  0x2a   : > { %v440_v22 = vand.u32 2147483647, %v436_v18  ;;  %v441_v23 = vand.u32 2147483647, %v437_v19  ;;  %v448_v30 = vmul.f32 0.5, %v436_v18  ;;  %v449_v31 = vmul.f32 0.5, %v437_v19 }
  0x2b   : > { %vm833_vm0 = vcmp.lt.f32.partialorder %v438_v20, 1.0  ;;  %vm837_vm1 = vcmp.lt.f32.partialorder %v439_v21, 1.0  ;;  %v450_v32 = vmul.f32 %v446_v24, %v434_v16  ;;  %v451_v33 = vmul.f32 %v447_v27, %v435_v17  ;;  %s680_s29 = sshll.u32 %s938_s18, 1 }
  0x2c   : > { %vm841_vm2 = vcmp.lt.f32.partialorder %v440_v22, 1.0  ;;  %vm845_vm3 = vcmp.lt.f32.partialorder %v441_v23, 1.0  ;;  %v685_v34 = vadd.f32 -0.5, %v438_v20  ;;  %v686_v35 = vadd.f32 -0.5, %v439_v21  ;;  %s305_s6 = scalar_lea.vmem %s922_s4, %s680_s29 }
  0x2d   : > { %v452_v36 = vmul.f32 %v448_v30, %v436_v18  ;;  %v453_v37 = vmul.f32 %v449_v31, %v437_v19  ;;  %v687_v38 = vadd.f32 -0.5, %v440_v22  ;;  %v688_v39 = vadd.f32 -0.5, %v441_v23 }
  0x2e   : > { %v458_v40 = vsel %vm833_vm0, %v450_v32, %v685_v34  ;;  %v459_v41 = vsel %vm837_vm1, %v451_v33, %v686_v35  ;;  %vm310_vm6 = vcmp.gt.f32.partialorder %v867_v58, 0.0  ;;  %vm307_vm7 = vcmp.ne.f32.partialorder %v867_v58, 0.0 }
  0x2f   : > { %v460_v42 = vsel %vm841_vm2, %v452_v36, %v687_v38  ;;  %v461_v43 = vsel %vm845_vm3, %v453_v37, %v688_v39  ;;  %v487_v44 = vrot.slane %v458_v40, 4  ;;  %v490_v45 = vrot.slane %v459_v41, 4 }
  0x30   : > { %v488_v46 = vrot.slane %v460_v42, 4  ;;  %v491_v47 = vrot.slane %v461_v43, 4  ;;  %v462_v48 = vsel %vm328_vm4, %v458_v40, 0.0  ;;  %v469_v50 = vsel %vm328_vm4, %v459_v41, 0.0 }
  0x31   : > { %v463_v49 = vrot.slane %v462_v48, 4  ;;  %v470_v59 = vrot.slane %v469_v50, 4  ;;  %v682_v7 = vsel %vm310_vm6, 1.0, %v751_v6  ;;  %v873_v11 = vsel %vm307_vm7, 1.0, %v751_v6 }
  0x32   : > { %v489_v51 = vsel %vm328_vm4, %v487_v44, %v488_v46  ;;  %v492_v52 = vsel %vm328_vm4, %v490_v45, %v491_v47  ;;  %v497_v53 = vsel %vm338_vm5, %v488_v46, 0.0  ;;  %v505_v54 = vsel %vm338_vm5, %v491_v47, 0.0 }
  0x33   : > { %v498_v55 = vadd.f32 %v497_v53, %v489_v51  ;;  %v506_v56 = vadd.f32 %v505_v54, %v492_v52  ;;  %v464_v57 = vadd.f32 %v463_v49, %v462_v48  ;;  %v471_v63 = vadd.f32 %v470_v59, %v469_v50 }
  0x34   : > { %v514_v16 = vperm.slane %v682_v7, 2  ;;  %v515_v17 = vperm.slane %v682_v7, 6  ;;  %v477_v18 = vperm.slane %v873_v11, 2  ;;  %v478_v19 = vperm.slane %v873_v11, 6 }
  0x35   : > { %v499_v60 = vrot.slane %v498_v55, 4  ;;  %v507_v61 = vrot.slane %v506_v56, 4  ;;  %v465_v62 = vrot.slane %v464_v57, 2  ;;  %v472_v3 = vrot.slane %v471_v63, 2 }
  0x36   : > { %v313_v34 = vlaneseq  ;;  %v752_v35 = vmov 0  }
  0x37   : > { %v500_v0 = vadd.f32 %v499_v60, %v498_v55  ;;  %v508_v1 = vadd.f32 %v507_v61, %v506_v56  ;;  %v466_v2 = vadd.f32 %v465_v62, %v464_v57  ;;  %v473_v8 = vadd.f32 %v472_v3, %v471_v63  ;;  %719 = vset.pattern.permute.xlu1 %v752_v35 }
  0x38   : > { %v308_v36 = vsel %vm307_vm7, 1, %v752_v35  ;;  %720 = vset.pattern.permute.xlu0 %v752_v35  ;;  %v314_v37 = vshrl.u32 %v313_v34, 7 }
  0x39   : > { %v501_v4 = vrot.slane %v500_v0, 2  ;;  %v509_v5 = vrot.slane %v508_v1, 2  ;;  %v467_v12 = vrot.slane %v466_v2, 1  ;;  %v474_v13 = vrot.slane %v473_v8, 1 }
  0x3a   : > { %v315_v38 = vperm.slane %v308_v36, 2  ;;  %v316_v39 = vperm.slane %v308_v36, 6 }
  0x3b   : > { %v502_v9 = vadd.f32 %v501_v4, %v500_v0  ;;  %v510_v10 = vadd.f32 %v509_v5, %v508_v1  ;;  %v468_v22 = vadd.f32 %v467_v12, %v466_v2  ;;  %v475_v23 = vadd.f32 %v474_v13, %v473_v8 }
  0x3c   : > { %v317_v40 = vperm.slane %v315_v38, 2  ;;  %v318_v41 = vperm.slane %v316_v39, 2 }
  0x3d   : > { %v503_v14 = vrot.slane %v502_v9, 1  ;;  %v511_v15 = vrot.slane %v510_v10, 1  ;;  %v481_v28 = vmul.f32 %v477_v18, %v468_v22  ;;  %v482_v29 = vmul.f32 %v478_v19, %v475_v23 }
  0x3e   : > { %vm319_vm9 = vcmp.eq.s32.totalorder %v314_v37, %v317_v40  ;;  %vm320_vm10 = vcmp.eq.s32.totalorder %v314_v37, %v318_v41  ;;  %v409_v40 = vsub.f32 1.0, %v873_v11 }
  0x3f   : > { %v504_v20 = vadd.f32 %v503_v14, %v502_v9  ;;  %v512_v21 = vadd.f32 %v511_v15, %v510_v10  ;;  %v520_v31 = vsel %vm417_vm8, %v481_v28, 0.0  ;;  %v521_v32 = vsel %vm417_vm8, %v482_v29, 0.0 }
  0x40   : > { %v522_v33 = vadd.f32 %v521_v32, %v520_v31  ;;  %v683_v42 = vsel %vm319_vm9, 1.0, %v751_v6  ;;  %v684_v43 = vsel %vm320_vm10, 1.0, %v751_v6 }
  0x41   : > { %v518_v24 = vmul.f32 %v514_v16, %v504_v20  ;;  %v519_v25 = vmul.f32 %v515_v17, %v512_v21  ;;  %v327_v44 = vrot.slane %v684_v43, 4 }
  0x43   : > { %v525_v26 = vsel %vm417_vm8, %v518_v24, 0.0  ;;  %v526_v27 = vsel %vm417_vm8, %v519_v25, 0.0  ;;  %v329_v45 = vsel %vm328_vm4, %v683_v42, %v327_v44 }
  0x44   : > { %v527_v30 = vadd.f32 %v526_v27, %v525_v26  ;;  %v331_v46 = vmul.f32 %v329_v45, %v867_v58 }
  0x46   : > { %528 = vadd.xlane.f32.xlu0 %v527_v30  ;;  %333 = vst [vmem:[#allocation1] ss:$2 sm:$0xff] %v331_v46  ;;  %v411_v46 = vperm.slane %v409_v40, 2 }
  0x4d   : > { %v334_v47 = vld.sshfl [vmem:[#allocation1] sm:$0xff pattern:$0x75316420]  ;;  %v335_v48 = vld.sshfl [vmem:[#allocation1 + $0x8] sm:$0xff pattern:$0x75316420] }
  0x4e   : > { %523 = vadd.xlane.f32.xlu0 %v522_v33  ;;  %354 = vst [vmem:[#allocation1] ss:$2 sm:$0xff] %v867_v58  ;;  %v339_v12 = vsel %vm338_vm5, %v334_v47, 0.0  ;;  %v346_v13 = vsel %vm338_vm5, %v335_v48, 0.0  ;;  %v412_v48 = vperm.slane %v409_v40, 6 }
  0x4f   : > { %v340_v16 = vrot.slane %v339_v12, 4  ;;  %v347_v19 = vrot.slane %v346_v13, 4 }
  0x51   : > { %v341_v23 = vadd.f32 %v340_v16, %v339_v12  ;;  %v348_v24 = vadd.f32 %v347_v19, %v346_v13 }
  0x53   : > { %v342_v29 = vrot.slane %v341_v23, 2  ;;  %v349_v30 = vrot.slane %v348_v24, 2 }
  0x55   : > { %v355_v50 = vld.sshfl [vmem:[#allocation1] sm:$0xff pattern:$0x75316420]  ;;  %v356_v51 = vld.sshfl [vmem:[#allocation1 + $0x8] sm:$0xff pattern:$0x75316420]  ;;  %v343_v35 = vadd.f32 %v342_v29, %v341_v23  ;;  %v350_v36 = vadd.f32 %v349_v30, %v348_v24 }
  0x56   : > { %v359_v52 = vsel %vm338_vm5, %v355_v50, -inf  ;;  %v366_v53 = vsel %vm338_vm5, %v356_v51, -inf }
  0x57   : > { %v360_v54 = vrot.slane %v359_v52, 4  ;;  %v367_v55 = vrot.slane %v366_v53, 4  ;;  %v344_v37 = vrot.slane %v343_v35, 1  ;;  %v351_v38 = vrot.slane %v350_v36, 1 }
  0x59   : > { %v361_v59 = vmax.f32 %v359_v52, %v360_v54  ;;  %v368_v60 = vmax.f32 %v366_v53, %v367_v55  ;;  %v345_v42 = vadd.f32 %v344_v37, %v343_v35  ;;  %v352_v44 = vadd.f32 %v351_v38, %v350_v36 }
  0x5b   : > { %v362_v62 = vrot.slane %v361_v59, 2  ;;  %v369_v63 = vrot.slane %v368_v60, 2 }
  0x5d   : > { %v363_v0 = vmax.f32 %v361_v59, %v362_v62  ;;  %v370_v1 = vmax.f32 %v368_v60, %v369_v63 }
  0x5f   : > { %v364_v2 = vrot.slane %v363_v0, 1  ;;  %v371_v3 = vrot.slane %v370_v1, 1 }
  0x61   : > { %v365_v4 = vmax.f32 %v363_v0, %v364_v2  ;;  %v372_v5 = vmax.f32 %v370_v1, %v371_v3 }
  0x63   : > { %v375_v6 = vrot.slane %v372_v5, 4 }
  0x65   : > { %v376_v7 = vsel %vm328_vm4, %v365_v4, %v375_v6 }
  0x66   : > { %v378_v8 = vsub.f32 %v867_v58, %v376_v7 }
  0x68   : > { %v379_v9 = vmul.f32 1.442695, %v378_v8 }
  0x6a   : > { %721 = vpow2.f32 %v379_v9 }
  0x70   : > { %v722_v10 = vpop.eup %721 }
  0x71   : > { %382 = vst [vmem:[#allocation1] ss:$2 sm:$0xff] %v722_v10 }
  0x78   : > { %v383_v14 = vld.sshfl [vmem:[#allocation1] sm:$0xff pattern:$0x75316420]  ;;  %v384_v15 = vld.sshfl [vmem:[#allocation1 + $0x8] sm:$0xff pattern:$0x75316420] }
  0x79   : > { %v387_v17 = vsel %vm338_vm5, %v383_v14, 0.0  ;;  %v394_v18 = vsel %vm338_vm5, %v384_v15, 0.0 }
  0x7a   : > { %v388_v20 = vrot.slane %v387_v17, 4  ;;  %v395_v21 = vrot.slane %v394_v18, 4 }
  0x7c   : > { %v389_v22 = vadd.f32 %v388_v20, %v387_v17  ;;  %v396_v58 = vadd.f32 %v395_v21, %v394_v18 }
  0x7e   : > { %v390_v25 = vrot.slane %v389_v22, 2  ;;  %v397_v26 = vrot.slane %v396_v58, 2 }
  0x80   : > { %v391_v27 = vadd.f32 %v390_v25, %v389_v22  ;;  %v398_v28 = vadd.f32 %v397_v26, %v396_v58 }
  0x82   : > { %v392_v31 = vrot.slane %v391_v27, 1  ;;  %v399_v32 = vrot.slane %v398_v28, 1 }
  0x84   : > { %v393_v33 = vadd.f32 %v392_v31, %v391_v27  ;;  %v400_v34 = vadd.f32 %v399_v32, %v398_v28 }
  0x86   : > { %723 = vlog2.f32 %v393_v33 }
  0x87   : > { %725 = vlog2.f32 %v400_v34 }
  0x8c   : > { %v724_v39 = vpop.eup %723 }
  0x8d   : > { %v726_v41 = vpop.eup %725  ;;  %v402_v43 = vmul.f32 0.6931472, %v724_v39 }
  0x8e   : > { %v404_v45 = vmul.f32 0.6931472, %v726_v41 }
  0x8f   : > { %v405_v47 = vadd.f32 %v402_v43, %v365_v4 }
  0x91   : > { %v407_v50 = vsub.f32 %v405_v47, %v345_v42 }
  0x93   : > { %v415_v52 = vmul.f32 %v411_v46, %v407_v50 }
  0x95   : > { %v418_v54 = vsel %vm417_vm8, %v415_v52, %v407_v50 }
  0xb9   : > { %v529_v49 = vpop.xlane.xlu0 %528 }
  0xba   : > { %v531_v56 = vrot.slane %v529_v49, 7  ;;  %v406_v49 = vadd.f32 %v404_v45, %v372_v5 }
  0xbc   : > { %v408_v51 = vsub.f32 %v406_v49, %v352_v44 }
  0xbe   : > { %v416_v53 = vmul.f32 %v412_v48, %v408_v51 }
  0xc0   : > { %v419_v11 = vsel %vm417_vm8, %v416_v53, %v408_v51 }
  0xc1   : > { %v524_v57 = vpop.xlane.xlu0 %523  ;;  %v422_v55 = vrot.slane %v419_v11, 6 }
  0xc2   : > { %v533_v61 = vsel %vm417_vm8, %v524_v57, %v531_v56 }
  0xc3   : > { %536 = vperm.xlu1 %719, %v533_v61   ;;  %v423_v56 = vsel %vm338_vm5, %v418_v54, %v422_v55 }
  0xc4   : > { %425 = vst [vmem:[%s300_s28] sm:$0xf] %v423_v56 }
 0x135   : > { %v537_v57 = vpop.permute.xlu1 %536 }
 0x136   : > { %539 = vst [vmem:[%s305_s6] sm:$0x3] %v537_v57 }
 0x137 PF: > { %p12_p10 = scmp.ge.s32.totalorder %s797_s19, 4   ;;  %s932_s15 = smov %s745_s16 }
 0x138   : > { %s933_s16 = smov %s806_s22  ;;  %s934_s17 = smov %s797_s19 }
 0x139   :  { %14 = sbr.rel (!%p12_p10) target bundleno = 2 (0x2), region = 136 }

</bundles_post_ra>
